<compile_context>
chip_gen: v7x
topology: tpu7x:2x2x1
jax: 0.10.0
libtpu: 0.0.40
codegen_flags: <defaults>
</compile_context>

<pallas_src>
import math
import functools

import jax
import jax.numpy as jnp
from jax.experimental import pallas as pl
from jax.experimental.pallas import tpu as pltpu


ACT_DTYPE = jnp.bfloat16            # activation / weight dtype fed to the MXU
_VMEM_LIMIT = 32 * 1024 * 1024      # raise v5e's 16MiB scoped default; headroom under v7x 64MiB


# ----------------------------- tiling helpers ------------------------------

def _tile(dim, max_tile, align, prefer=None):
    """Largest block <= max_tile that evenly divides `dim` and is a multiple of
    `prefer` (if given, e.g. 256 for v6e/v7x MXU) or `align`, else the full dim."""
    if dim <= max_tile:
        return dim
    for a in ([prefer] if prefer else []) + [align]:
        for t in range(max_tile, a - 1, -1):
            if dim % t == 0 and t % a == 0:
                return t
    # TODO(synk): awkward (prime-ish) dims fall back to one full-extent block;
    # pad such dims up-front instead of relying on this fallback for huge sizes.
    return dim


# ----------------------------- linear (matmul+bias) ------------------------

def _matmul_bias_kernel(x_ref, w_ref, b_ref, o_ref, acc_ref):
    # grid = (N/tm, Dout/tn, Din/tk); k (reduction) axis last / "arbitrary".
    @pl.when(pl.program_id(2) == 0)
    def _():
        acc_ref[...] = jnp.zeros_like(acc_ref)

    acc_ref[...] += jnp.dot(x_ref[...], w_ref[...],
                            preferred_element_type=jnp.float32)

    @pl.when(pl.program_id(2) == pl.num_programs(2) - 1)
    def _():
        o_ref[...] = (acc_ref[...] + b_ref[...]).astype(o_ref.dtype)


def linear(x, w, b, *, out_dtype=ACT_DTYPE, max_tm=512, max_tn=512, max_tk=512):
    """y = x @ w + b.  bf16 operands, f32 accumulation, 256-preferred tiles."""
    n, din = x.shape
    dout = w.shape[1]
    tm = _tile(n, max_tm, 8)
    tn = _tile(dout, max_tn, 128, prefer=256)
    tk = _tile(din, max_tk, 128, prefer=256)
    grid = (n // tm, dout // tn, din // tk)
    cost = pl.CostEstimate(
        flops=2 * n * din * dout, transcendentals=0,
        bytes_accessed=(n * din + din * dout) * x.dtype.itemsize
                       + n * dout * jnp.dtype(out_dtype).itemsize)
    return pl.pallas_call(
        _matmul_bias_kernel,
        grid=grid,
        in_specs=[
            pl.BlockSpec((tm, tk), lambda i, j, k: (i, k)),
            pl.BlockSpec((tk, tn), lambda i, j, k: (k, j)),
            pl.BlockSpec((1, tn), lambda i, j, k: (0, j)),
        ],
        out_specs=pl.BlockSpec((tm, tn), lambda i, j, k: (i, j)),
        out_shape=jax.ShapeDtypeStruct((n, dout), out_dtype),
        scratch_shapes=[pltpu.VMEM((tm, tn), jnp.float32)],
        compiler_params=pltpu.CompilerParams(
            dimension_semantics=("parallel", "parallel", "arbitrary"),
            vmem_limit_bytes=_VMEM_LIMIT),
        cost_estimate=cost,
    )(x, w, b.reshape(1, dout))


# ------------------- fused W_o @ ctx + residual + LayerNorm ----------------

def _proj_add_ln_kernel(a_ref, w_ref, r_ref, b_ref, g_ref, beta_ref, o_ref, acc_ref):
    # out = LayerNorm(residual + (a @ W_o + b_o)); grid = (rows, k-reduction).
    @pl.when(pl.program_id(1) == 0)
    def _():
        acc_ref[...] = jnp.zeros_like(acc_ref)

    acc_ref[...] += jnp.dot(a_ref[...], w_ref[...],
                            preferred_element_type=jnp.float32)

    @pl.when(pl.program_id(1) == pl.num_programs(1) - 1)
    def _():
        h = acc_ref[...] + b_ref[...] + r_ref[...].astype(jnp.float32)
        mean = jnp.mean(h, axis=-1, keepdims=True)
        var = jnp.mean(jnp.square(h - mean), axis=-1, keepdims=True)
        y = (h - mean) * jax.lax.rsqrt(var + 1e-5) * g_ref[...] + beta_ref[...]
        o_ref[...] = y.astype(o_ref.dtype)


def proj_add_layernorm(attn_ctx, resid, w, b, gamma, beta, *, max_tm=256, max_tk=512):
    n, d = resid.shape
    tm = _tile(n, max_tm, 8)
    tk = _tile(d, max_tk, 128, prefer=256)   # W_o never fully resident in VMEM
    grid = (n // tm, d // tk)
    cost = pl.CostEstimate(
        flops=2 * n * d * d, transcendentals=0,
        bytes_accessed=(3 * n * d + d * d) * attn_ctx.dtype.itemsize)
    return pl.pallas_call(
        _proj_add_ln_kernel,
        grid=grid,
        in_specs=[
            pl.BlockSpec((tm, tk), lambda i, k: (i, k)),   # attention context
            pl.BlockSpec((tk, d), lambda i, k: (k, 0)),    # W_o (k-tiled)
            pl.BlockSpec((tm, d), lambda i, k: (i, 0)),    # residual (revisited, no re-DMA)
            pl.BlockSpec((1, d), lambda i, k: (0, 0)),     # b_o
            pl.BlockSpec((1, d), lambda i, k: (0, 0)),     # gamma
            pl.BlockSpec((1, d), lambda i, k: (0, 0)),     # beta
        ],
        out_specs=pl.BlockSpec((tm, d), lambda i, k: (i, 0)),
        out_shape=jax.ShapeDtypeStruct((n, d), ACT_DTYPE),
        scratch_shapes=[pltpu.VMEM((tm, d), jnp.float32)],
        compiler_params=pltpu.CompilerParams(
            dimension_semantics=("parallel", "arbitrary"),
            vmem_limit_bytes=_VMEM_LIMIT),
        cost_estimate=cost,
    )(attn_ctx, w, resid, b.reshape(1, d), gamma.reshape(1, d), beta.reshape(1, d))


# ------------------------ fused FFN + residual + LayerNorm -----------------

def _ffn_add_ln_kernel(x_ref, w1_ref, b1_ref, w2_ref, b2_ref, g_ref, beta_ref,
                       o_ref, acc_ref):
    # out = LayerNorm(x + fc2(relu(fc1(x)))); grid = (rows, d_ff tiles).
    f = pl.program_id(1)

    @pl.when(f == 0)
    def _():
        acc_ref[...] = jnp.zeros_like(acc_ref)

    x = x_ref[...]
    h = jnp.dot(x, w1_ref[...], preferred_element_type=jnp.float32) + b1_ref[...]
    h = jnp.maximum(h, 0.0).astype(x.dtype)          # relu, bf16 back onto the MXU
    acc_ref[...] += jnp.dot(h, w2_ref[...], preferred_element_type=jnp.float32)

    @pl.when(f == pl.num_programs(1) - 1)
    def _():
        r = acc_ref[...] + b2_ref[...] + x_ref[...].astype(jnp.float32)
        mean = jnp.mean(r, axis=-1, keepdims=True)
        var = jnp.mean(jnp.square(r - mean), axis=-1, keepdims=True)
        y = (r - mean) * jax.lax.rsqrt(var + 1e-5) * g_ref[...] + beta_ref[...]
        o_ref[...] = y.astype(o_ref.dtype)


def ffn_add_layernorm(x, w1, b1, w2, b2, gamma, beta, *, max_tm=256, max_tf=512):
    n, d = x.shape
    dff = w1.shape[1]
    tm = _tile(n, max_tm, 8)
    tf = _tile(dff, max_tf, 128, prefer=256)   # d_ff tiled -> size-robust on v7x/v5e
    grid = (n // tm, dff // tf)
    cost = pl.CostEstimate(
        flops=4 * n * d * dff, transcendentals=0,
        bytes_accessed=(2 * n * d + 2 * d * dff) * x.dtype.itemsize)
    return pl.pallas_call(
        _ffn_add_ln_kernel,
        grid=grid,
        in_specs=[
            pl.BlockSpec((tm, d), lambda i, f: (i, 0)),    # x (revisited across f)
            pl.BlockSpec((d, tf), lambda i, f: (0, f)),    # W1 (d_ff tiled)
            pl.BlockSpec((1, tf), lambda i, f: (0, f)),    # b1
            pl.BlockSpec((tf, d), lambda i, f: (f, 0)),    # W2 (d_ff tiled)
            pl.BlockSpec((1, d), lambda i, f: (0, 0)),     # b2
            pl.BlockSpec((1, d), lambda i, f: (0, 0)),     # gamma
            pl.BlockSpec((1, d), lambda i, f: (0, 0)),     # beta
        ],
        out_specs=pl.BlockSpec((tm, d), lambda i, f: (i, 0)),
        out_shape=jax.ShapeDtypeStruct((n, d), ACT_DTYPE),
        scratch_shapes=[pltpu.VMEM((tm, d), jnp.float32)],
        compiler_params=pltpu.CompilerParams(
            dimension_semantics=("parallel", "arbitrary"),
            vmem_limit_bytes=_VMEM_LIMIT),
        cost_estimate=cost,
    )(x, w1, b1.reshape(1, dff), w2, b2.reshape(1, d),
      gamma.reshape(1, d), beta.reshape(1, d))


# --------------------------------- attention --------------------------------

def _attn_kernel(*refs, num_heads, scale, causal, has_q_valid, has_k_valid):
    it = iter(refs)
    qval_ref = next(it) if has_q_valid else None
    kval_ref = next(it) if has_k_valid else None
    q_ref, k_ref, v_ref, o_ref = next(it), next(it), next(it), next(it)

    q = q_ref[0]          # (Sq, D) bf16, lane-dense
    k = k_ref[0]          # (Sk, D)
    v = v_ref[0]          # (Sk, D)
    sq, d = q.shape
    sk = k.shape[0]
    dh = d // num_heads

    # Additive mask bias in f32, shared across heads; no O(B*Sq*Sk) HBM mask.
    bias = jnp.zeros((sq, sk), jnp.float32)
    if has_k_valid:
        bias = jnp.where(kval_ref[0] > 0.5, bias, -1e9)     # (1, Sk) broadcast
    if has_q_valid:
        bias = jnp.where(qval_ref[0] > 0.5, bias, -1e9)     # (Sq, 1) broadcast
    if causal:
        qi = jax.lax.broadcasted_iota(jnp.int32, (sq, sk), 0)
        ki = jax.lax.broadcasted_iota(jnp.int32, (sq, sk), 1)
        bias = jnp.where(ki <= qi, bias, -1e9)

    dn = (((1,), (1,)), ((), ()))   # contract last dims of both operands (no explicit .T)
    # TODO(synk): for long sequences / many heads, switch to a flash-style
    # Sk-tiled online softmax with a batched-over-heads dot_general so VMEM
    # stays O(tile^2) and MXU calls stay >=128 lanes even for small d_head.
    for h in range(num_heads):      # static unrolled head loop
        lo, hi = h * dh, (h + 1) * dh
        s = jax.lax.dot_general(q[:, lo:hi], k[:, lo:hi], dn,
                                preferred_element_type=jnp.float32)
        s = s * scale + bias
        s = s - jnp.max(s, axis=-1, keepdims=True)
        e = jnp.exp(s)
        p = e * pl.reciprocal(jnp.sum(e, axis=-1, keepdims=True), approx=True)
        ctx = jnp.dot(p.astype(v.dtype), v[:, lo:hi],
                      preferred_element_type=jnp.float32)
        o_ref[0, :, lo:hi] = ctx.astype(o_ref.dtype)   # direct lane-slice store


def attention(q_src, k_src, v_src, *, d_model, num_heads, causal,
              q_block=0, k_block=0, v_block=0, q_valid=None, k_valid=None):
    """q_src / k_src / v_src: (B, S, m*d_model) buffers (may all be the SAME
    fused QKV / KV projection buffer); *_block selects the lane block of width
    d_model, so no XLA-level slice copy of the projection output is made."""
    B, Sq, _ = q_src.shape
    Sk = k_src.shape[1]
    D = d_model
    scale = 1.0 / math.sqrt(D // num_heads)

    in_specs, inputs = [], []
    if q_valid is not None:                                   # (B, Sq, 1) f32
        in_specs.append(pl.BlockSpec((1, Sq, 1), lambda b: (b, 0, 0)))
        inputs.append(q_valid)
    if k_valid is not None:                                   # (B, 1, Sk) f32, lane-major
        in_specs.append(pl.BlockSpec((1, 1, Sk), lambda b: (b, 0, 0)))
        inputs.append(k_valid)
    in_specs += [
        pl.BlockSpec((1, Sq, D), lambda b, o=q_block: (b, 0, o)),
        pl.BlockSpec((1, Sk, D), lambda b, o=k_block: (b, 0, o)),
        pl.BlockSpec((1, Sk, D), lambda b, o=v_block: (b, 0, o)),
    ]
    inputs += [q_src, k_src, v_src]

    kernel = functools.partial(
        _attn_kernel, num_heads=num_heads, scale=scale, causal=causal,
        has_q_valid=q_valid is not None, has_k_valid=k_valid is not None)
    cost = pl.CostEstimate(
        flops=4 * B * Sq * Sk * D,
        transcendentals=B * num_heads * Sq * Sk,
        bytes_accessed=2 * B * (2 * Sq * D + 2 * Sk * D))
    return pl.pallas_call(
        kernel,
        grid=(B,),
        in_specs=in_specs,
        out_specs=pl.BlockSpec((1, Sq, D), lambda b: (b, 0, 0)),
        out_shape=jax.ShapeDtypeStruct((B, Sq, D), ACT_DTYPE),
        compiler_params=pltpu.CompilerParams(
            dimension_semantics=("parallel",),
            vmem_limit_bytes=_VMEM_LIMIT),
        cost_estimate=cost,
    )(*inputs)


# ----------------------------- parameter init -----------------------------

def init_linear_params(key, din, dout):
    k1, k2 = jax.random.split(key)
    bound = 1.0 / math.sqrt(din)
    return {
        # weights stored bf16 (MXU operands); biases stay f32 (added to f32 acc)
        "w": jax.random.uniform(k1, (din, dout), jnp.float32, -bound, bound).astype(ACT_DTYPE),
        "b": jax.random.uniform(k2, (dout,), jnp.float32, -bound, bound),
    }


def init_mha_params(key, d_model):
    ks = jax.random.split(key, 4)
    p = {name: init_linear_params(k, d_model, d_model)
         for name, k in zip(("wq", "wk", "wv", "wo"), ks)}
    # Pre-fused projections: one matmul for Q|K|V (self) and K|V (cross).
    p["w_qkv"] = jnp.concatenate([p["wq"]["w"], p["wk"]["w"], p["wv"]["w"]], axis=1)
    p["b_qkv"] = jnp.concatenate([p["wq"]["b"], p["wk"]["b"], p["wv"]["b"]])
    p["w_kv"] = jnp.concatenate([p["wk"]["w"], p["wv"]["w"]], axis=1)
    p["b_kv"] = jnp.concatenate([p["wk"]["b"], p["wv"]["b"]])
    return p


def init_ln_params(d_model):
    return {"g": jnp.ones((d_model,), jnp.float32),
            "b": jnp.zeros((d_model,), jnp.float32)}


def init_ffn_params(key, d_model, d_ff):
    k1, k2 = jax.random.split(key)
    return {"fc1": init_linear_params(k1, d_model, d_ff),
            "fc2": init_linear_params(k2, d_ff, d_model)}


def init_encoder_layer(key, d_model, d_ff):
    k1, k2 = jax.random.split(key)
    return {"self_attn": init_mha_params(k1, d_model),
            "ff": init_ffn_params(k2, d_model, d_ff),
            "norm1": init_ln_params(d_model),
            "norm2": init_ln_params(d_model)}


def init_decoder_layer(key, d_model, d_ff):
    k1, k2, k3 = jax.random.split(key, 3)
    return {"self_attn": init_mha_params(k1, d_model),
            "cross_attn": init_mha_params(k2, d_model),
            "ff": init_ffn_params(k3, d_model, d_ff),
            "norm1": init_ln_params(d_model),
            "norm2": init_ln_params(d_model),
            "norm3": init_ln_params(d_model)}


def init_transformer(key, src_vocab, tgt_vocab, d_model, num_layers, d_ff):
    keys = jax.random.split(key, 3 + 2 * num_layers)
    return {
        "enc_emb": jax.random.normal(keys[0], (src_vocab, d_model), jnp.float32),
        "dec_emb": jax.random.normal(keys[1], (tgt_vocab, d_model), jnp.float32),
        "fc": init_linear_params(keys[2], d_model, tgt_vocab),
        "enc_layers": [init_encoder_layer(keys[3 + i], d_model, d_ff)
                       for i in range(num_layers)],
        "dec_layers": [init_decoder_layer(keys[3 + num_layers + i], d_model, d_ff)
                       for i in range(num_layers)],
    }


# ----------------------------- model forward ------------------------------

def positional_encoding(d_model, max_len):
    assert d_model % 2 == 0, "positional encoding requires even d_model"
    pos = jnp.arange(max_len, dtype=jnp.float32)[:, None]
    div = jnp.exp(jnp.arange(0, d_model, 2, dtype=jnp.float32)
                  * (-math.log(10000.0) / d_model))
    pe = jnp.zeros((max_len, d_model), jnp.float32)
    pe = pe.at[:, 0::2].set(jnp.sin(pos * div))
    pe = pe.at[:, 1::2].set(jnp.cos(pos * div))
    return pe


def mha_self_context(p, x, num_heads, causal, q_valid=None, k_valid=None):
    """Fused QKV projection + attention; W_o is applied fused with residual+LN."""
    B, S, D = x.shape
    qkv = linear(x.reshape(B * S, D), p["w_qkv"], p["b_qkv"])    # (B*S, 3D) bf16
    if D % 128 == 0:
        # Consume the fused buffer directly: lane-block BlockSpecs, no slice copies.
        qkv3 = qkv.reshape(B, S, 3 * D)
        ctx = attention(qkv3, qkv3, qkv3, d_model=D, num_heads=num_heads,
                        causal=causal, q_block=0, k_block=1, v_block=2,
                        q_valid=q_valid, k_valid=k_valid)
    else:
        # Fallback for non-128-aligned d_model (lane-block indexing needs 128-aligned D).
        q = qkv[:, :D].reshape(B, S, D)
        k = qkv[:, D:2 * D].reshape(B, S, D)
        v = qkv[:, 2 * D:].reshape(B, S, D)
        ctx = attention(q, k, v, d_model=D, num_heads=num_heads, causal=causal,
                        q_valid=q_valid, k_valid=k_valid)
    return ctx.reshape(B * S, D)


def mha_cross_context(p, x, enc, num_heads, q_valid=None, k_valid=None):
    B, Sq, D = x.shape
    Sk = enc.shape[1]
    q = linear(x.reshape(B * Sq, D), p["wq"]["w"], p["wq"]["b"]).reshape(B, Sq, D)
    kv = linear(enc.reshape(B * Sk, D), p["w_kv"], p["b_kv"])    # (B*Sk, 2D) bf16
    if D % 128 == 0:
        kv2 = kv.reshape(B, Sk, 2 * D)
        ctx = attention(q, kv2, kv2, d_model=D, num_heads=num_heads, causal=False,
                        q_block=0, k_block=0, v_block=1,
                        q_valid=q_valid, k_valid=k_valid)
    else:
        k = kv[:, :D].reshape(B, Sk, D)
        v = kv[:, D:].reshape(B, Sk, D)
        ctx = attention(q, k, v, d_model=D, num_heads=num_heads, causal=False,
                        q_valid=q_valid, k_valid=k_valid)
    return ctx.reshape(B * Sq, D)


def encoder_layer_forward(p, x, src_kvalid, num_heads):
    B, S, D = x.shape
    x_flat = x.reshape(B * S, D)
    ctx = mha_self_context(p["self_attn"], x, num_heads, causal=False,
                           k_valid=src_kvalid)
    x_flat = proj_add_layernorm(ctx, x_flat,
                                p["self_attn"]["wo"]["w"], p["self_attn"]["wo"]["b"],
                                p["norm1"]["g"], p["norm1"]["b"])
    x_flat = ffn_add_layernorm(x_flat,
                               p["ff"]["fc1"]["w"], p["ff"]["fc1"]["b"],
                               p["ff"]["fc2"]["w"], p["ff"]["fc2"]["b"],
                               p["norm2"]["g"], p["norm2"]["b"])
    return x_flat.reshape(B, S, D)


def decoder_layer_forward(p, x, enc, tgt_qvalid, src_kvalid, num_heads):
    B, S, D = x.shape
    x_flat = x.reshape(B * S, D)
    ctx = mha_self_context(p["self_attn"], x, num_heads, causal=True,
                           q_valid=tgt_qvalid)
    x_flat = proj_add_layernorm(ctx, x_flat,
                                p["self_attn"]["wo"]["w"], p["self_attn"]["wo"]["b"],
                                p["norm1"]["g"], p["norm1"]["b"])
    ctx = mha_cross_context(p["cross_attn"], x_flat.reshape(B, S, D), enc, num_heads,
                            k_valid=src_kvalid)
    x_flat = proj_add_layernorm(ctx, x_flat,
                                p["cross_attn"]["wo"]["w"], p["cross_attn"]["wo"]["b"],
                                p["norm2"]["g"], p["norm2"]["b"])
    x_flat = ffn_add_layernorm(x_flat,
                               p["ff"]["fc1"]["w"], p["ff"]["fc1"]["b"],
                               p["ff"]["fc2"]["w"], p["ff"]["fc2"]["b"],
                               p["norm3"]["g"], p["norm3"]["b"])
    return x_flat.reshape(B, S, D)


def transformer_forward(params, src, tgt, d_model, num_heads):
    assert d_model % num_heads == 0
    B, Ss = src.shape
    St = tgt.shape[1]

    # generate_mask() semantics as tiny per-token validity vectors (no O(B*S^2)
    # mask tensor is ever materialized or DMA'd):
    #   src_mask -> keys valid iff src != 0   (encoder self-attn + decoder cross-attn)
    #   tgt_mask -> queries valid iff tgt != 0, plus causal   (decoder self-attn)
    src_kvalid = (src != 0).astype(jnp.float32).reshape(B, 1, Ss)   # lane-major
    tgt_qvalid = (tgt != 0).astype(jnp.float32).reshape(B, St, 1)

    pe = positional_encoding(d_model, max(Ss, St))

    # Embedding gather + positional encoding left to XLA; one cast to bf16.
    # Dropout layers are identity (inference / eval semantics).
    enc = (jnp.take(params["enc_emb"], src, axis=0) + pe[None, :Ss]).astype(ACT_DTYPE)
    dec = (jnp.take(params["dec_emb"], tgt, axis=0) + pe[None, :St]).astype(ACT_DTYPE)

    for lp in params["enc_layers"]:
        enc = encoder_layer_forward(lp, enc, src_kvalid, num_heads)

    for lp in params["dec_layers"]:
        dec = decoder_layer_forward(lp, dec, enc, tgt_qvalid, src_kvalid, num_heads)

    out = linear(dec.reshape(B * St, d_model), params["fc"]["w"], params["fc"]["b"],
                 out_dtype=jnp.float32)                         # f32 logits
    return out.reshape(B, St, -1)


# --------------------------------- main ------------------------------------

if __name__ == "__main__":
    # small config (d_model 128-aligned so the fused-QKV lane-block path is exercised)
    src_vocab = 16
    tgt_vocab = 16
    d_model = 128
    num_heads = 4
    num_layers = 2
    d_ff = 256
    batch = 2
    seq = 8

    key = jax.random.PRNGKey(0)
    kp, ks, kt = jax.random.split(key, 3)

    params = init_transformer(kp, src_vocab, tgt_vocab, d_model, num_layers, d_ff)
    src = jax.random.randint(ks, (batch, seq), 0, src_vocab, dtype=jnp.int32)
    tgt = jax.random.randint(kt, (batch, seq), 0, tgt_vocab, dtype=jnp.int32)

    out = transformer_forward(params, src, tgt, d_model, num_heads)
    out = jax.block_until_ready(out)

    assert out.shape == (batch, seq, tgt_vocab)
    assert bool(jnp.all(jnp.isfinite(out)))
    print("KERNEL_OK")
</pallas_src>

<mosaic_0001>
module attributes {stable_mosaic.version = 11 : i64} {
  func.func @_matmul_bias_kernel(%arg0: i32, %arg1: i32, %arg2: i32, %arg3: memref<16x128xbf16, #tpu.memory_space<vmem>>, %arg4: memref<128x384xbf16, #tpu.memory_space<vmem>>, %arg5: memref<1x384xf32, #tpu.memory_space<vmem>>, %arg6: memref<16x384xbf16, #tpu.memory_space<vmem>>, %arg7: memref<16x384xf32, #tpu.memory_space<vmem>>) attributes {dimension_semantics = [#tpu.dimension_semantics<parallel>, #tpu.dimension_semantics<parallel>, #tpu.dimension_semantics<arbitrary>], iteration_bounds = array<i64: 1, 1, 1>, scalar_prefetch = 0 : i64, scratch_operands = 1 : i64, tpu.core_type = #tpu.core_type<tc>, window_params = [{transform_indices = @transform_0, window_bounds = array<i64: 16, 128>}, {transform_indices = @transform_1, window_bounds = array<i64: 128, 384>}, {transform_indices = @transform_2, window_bounds = array<i64: 1, 384>}, {transform_indices = @transform_3, window_bounds = array<i64: 16, 384>}]} {
    %c0_i32 = arith.constant 0 : i32
    %0 = arith.cmpi eq, %arg2, %c0_i32 : i32
    %1 = arith.extui %0 : i1 to i32
    %c0_i32_0 = arith.constant 0 : i32
    %2 = arith.cmpi ne, %1, %c0_i32_0 : i32
    scf.if %2 {
      %cst_10 = arith.constant 0.000000e+00 : f32
      %12 = vector.broadcast %cst_10 : f32 to vector<16x384xf32>
      %c0_11 = arith.constant 0 : index
      %c0_12 = arith.constant 0 : index
      %13 = vector.load %arg7[%c0_11, %c0_12] : memref<16x384xf32, #tpu.memory_space<vmem>>, vector<16x384xf32>
      tpu.vector_store %arg7[%c0_11, %c0_12], %12 {strides = array<i32>} : memref<16x384xf32, #tpu.memory_space<vmem>>, vector<16x384xf32>,
    } else {
    }
    %c0 = arith.constant 0 : index
    %c0_1 = arith.constant 0 : index
    %3 = vector.load %arg7[%c0, %c0_1] : memref<16x384xf32, #tpu.memory_space<vmem>>, vector<16x384xf32>
    %c0_2 = arith.constant 0 : index
    %c0_3 = arith.constant 0 : index
    %4 = vector.load %arg3[%c0_2, %c0_3] : memref<16x128xbf16, #tpu.memory_space<vmem>>, vector<16x128xbf16>
    %c0_4 = arith.constant 0 : index
    %c0_5 = arith.constant 0 : index
    %5 = vector.load %arg4[%c0_4, %c0_5] : memref<128x384xbf16, #tpu.memory_space<vmem>>, vector<128x384xbf16>
    %cst = arith.constant dense<0.000000e+00> : vector<16x384xf32>
    %6 = tpu.matmul %4, %5, %cst {dimension_numbers = #tpu.dot_dimension_numbers<[1], [0], [0], [1], [0, 0, 1, 1], [], []>} : vector<16x128xbf16>, vector<128x384xbf16>, vector<16x384xf32> -> vector<16x384xf32>
    %7 = arith.addf %3, %6 : vector<16x384xf32>
    %c0_6 = arith.constant 0 : index
    %c0_7 = arith.constant 0 : index
    %8 = vector.load %arg7[%c0_6, %c0_7] : memref<16x384xf32, #tpu.memory_space<vmem>>, vector<16x384xf32>
    tpu.vector_store %arg7[%c0_6, %c0_7], %7 {strides = array<i32>} : memref<16x384xf32, #tpu.memory_space<vmem>>, vector<16x384xf32>,
    %c0_i32_8 = arith.constant 0 : i32
    %9 = arith.cmpi eq, %arg2, %c0_i32_8 : i32
    %10 = arith.extui %9 : i1 to i32
    %c0_i32_9 = arith.constant 0 : i32
    %11 = arith.cmpi ne, %10, %c0_i32_9 : i32
    scf.if %11 {
      %c0_10 = arith.constant 0 : index
      %c0_11 = arith.constant 0 : index
      %12 = vector.load %arg7[%c0_10, %c0_11] : memref<16x384xf32, #tpu.memory_space<vmem>>, vector<16x384xf32>
      %c0_12 = arith.constant 0 : index
      %c0_13 = arith.constant 0 : index
      %13 = vector.load %arg5[%c0_12, %c0_13] : memref<1x384xf32, #tpu.memory_space<vmem>>, vector<1x384xf32>
      %14 = vector.broadcast %13 : vector<1x384xf32> to vector<16x384xf32>
      %15 = arith.addf %12, %14 : vector<16x384xf32>
      %16 = arith.truncf %15 : vector<16x384xf32> to vector<16x384xbf16>
      %c0_14 = arith.constant 0 : index
      %c0_15 = arith.constant 0 : index
      %17 = vector.load %arg6[%c0_14, %c0_15] : memref<16x384xbf16, #tpu.memory_space<vmem>>, vector<16x384xbf16>
      tpu.vector_store %arg6[%c0_14, %c0_15], %16 {strides = array<i32>} : memref<16x384xbf16, #tpu.memory_space<vmem>>, vector<16x384xbf16>,
    } else {
    }
    return
  }
  func.func @transform_0(%arg0: i32, %arg1: i32, %arg2: i32) -> (i32, i32) {
    %c0_i32 = arith.constant 0 : i32
    return %arg0, %arg2 : i32, i32
  }
  func.func @transform_1(%arg0: i32, %arg1: i32, %arg2: i32) -> (i32, i32) {
    %c0_i32 = arith.constant 0 : i32
    return %arg2, %arg1 : i32, i32
  }
  func.func @transform_2(%arg0: i32, %arg1: i32, %arg2: i32) -> (i32, i32) {
    %c0_i32 = arith.constant 0 : i32
    %c0_i32_0 = arith.constant 0 : i32
    return %c0_i32, %arg1 : i32, i32
  }
  func.func @transform_3(%arg0: i32, %arg1: i32, %arg2: i32) -> (i32, i32) {
    %c0_i32 = arith.constant 0 : i32
    return %arg0, %arg1 : i32, i32
  }
}

</mosaic_0001>

<bundles_post_ra>
// kernel: tpu_custom_call.1
= control target key start
LH: loop header
LB: loop body
LE: loop exit
PB: predicated region body
PF: predicated region fallthrough
CT: control target
= control target key end

     0   :  { %8 = vsyncpa [#allocation4], 0  ;;  %s650_s0 = inlined_call_operand.hbm [shape: bf16[16,128], index: 0, kind: input, shape index: {}]   ;;  %s651_s1 = inlined_call_operand.hbm [shape: bf16[128,384], index: 1, kind: input, shape index: {}]   ;;  %s652_s2 = inlined_call_operand.vmem [shape: f32[1,384], index: 2, kind: input, shape index: {}]   ;;  %s653_s3 = inlined_call_operand.hbm [shape: bf16[16,384], index: 3, kind: output, shape index: {}]  }
   0x1   :  { %9 = vsyncpa [#allocation7], 0 }
   0x2   :  { %10 = vsyncpa [#allocation5], 0  ;;  %s575_s12 = smov [#allocation3]   ;;  %s503_s16 = scalar_lea.hbm %s650_s0, 128 }
   0x3   :  { %s16_s13 = sshll.u32 %s575_s12, 4  ;;  %p504_p0 = scmp.ne.s32.totalorder %s650_s0, %s503_s16  ;;  %s17_s13 = int_to_ptr.vmem [resolvable:$true] %s16_s13 }
   0x4   :  { %p507_p1 = scmp.lt.u32.totalorder %s503_s16, %s650_s0 }
   0x6   :  { %p509_p2 = pnand %p507_p1, %p504_p0 }
   0x8   :  { %512 = shalt.err (!%p509_p2)
}
   0x9   :  { %s513_s21 = scalar_lea.vmem %s17_s13, 128  ;;  %p518_p4 = scmp.lt.s32.totalorder %s17_s13, %s17_s13 }
   0xa   :  { %p514_p3 = scmp.ne.s32.totalorder %s17_s13, %s513_s21  ;;  %p519_p5 = scmp.lt.s32.totalorder %s513_s21, %s513_s21 }
   0xc   :  { %p520_p6 = por %p519_p5, %p518_p4 }
   0xe   :  { %p521_p7 = pnand %p520_p6, %p514_p3 }
  0x10   :  { %524 = shalt.err (!%p521_p7)
}
  0x11   :  { %s576_s22 = smov 64   ;;  %s577_s23 = smov 4  }
  0x12   :  { %22 = dma.hbm_to_vmem [thread:$0]  %s650_s0, 128, %s17_s13, [#allocation4], %s576_s22, %s576_s22, %s577_s23  }
  0x13   :  { %s578_s26 = smov [#allocation6]   ;;  %s525_s30 = scalar_lea.hbm %s651_s1, 3072 }
  0x14   :  { %s28_s27 = sshll.u32 %s578_s26, 4  ;;  %p526_p8 = scmp.ne.s32.totalorder %s651_s1, %s525_s30  ;;  %s29_s27 = int_to_ptr.vmem [resolvable:$true] %s28_s27 }
  0x15   :  { %p529_p9 = scmp.lt.u32.totalorder %s525_s30, %s651_s1 }
  0x17   :  { %p531_p10 = pnand %p529_p9, %p526_p8 }
  0x19   :  { %534 = shalt.err (!%p531_p10)
}
  0x1a   :  { %s535_s8 = scalar_lea.vmem %s29_s27, 3072  ;;  %p540_p12 = scmp.lt.s32.totalorder %s29_s27, %s29_s27 }
  0x1b   :  { %p536_p11 = scmp.ne.s32.totalorder %s29_s27, %s535_s8  ;;  %p541_p13 = scmp.lt.s32.totalorder %s535_s8, %s535_s8 }
  0x1d   :  { %p542_p0 = por %p541_p13, %p540_p12 }
  0x1f   :  { %p543_p1 = pnand %p542_p0, %p536_p11 }
  0x21   :  { %546 = shalt.err (!%p543_p1)
}
  0x22   :  { %s579_s0 = smov 192   ;;  %s580_s9 = smov 12  }
  0x23   :  { %34 = dma.hbm_to_vmem [thread:$0]  %s651_s1, 3072, %s29_s27, [#allocation7], %s579_s0, %s579_s0, %s580_s9  }
  0x24   :  { %569 = dma.done.wait [#allocation4], 128  }
  0x25   :  { %570 = vsyncadd [#allocation4], 4294967168 }
  0x26   :  { %571 = dma.done.wait [#allocation7], 3072  }
  0x27   :  { %572 = vsyncadd [#allocation7], 4294964224  ;;  %v581_v0 = vmov 0.0   ;;  %vm582_vm0 = vmmov 0   ;;  %v583_v1 = vmov 0   ;;  %v502_v26 = vld [vmem:[#allocation3] sm:$0xff]   ;;  %v335_v27 = vlaneseq }
  0x28   :  { %440 = vmatprep.subr.bf16.mxu1 %v581_v0  ;;  %456 = vmatprep.mubr.msk.bf16.mxu1 %vm582_vm0, %v581_v0  ;;  %v470_v2 = vld [vmem:[#allocation6 + $0x4] ss:$12 sps:$4 sm:$0xff]   ;;  %v472_v3 = vld [vmem:[#allocation6 + $0x8] ss:$12 sps:$4 sm:$0xff]   ;;  %v473_v4 = vld [vmem:[#allocation6] ss:$12 sps:$4 sm:$0xff]  }
  0x29   :  { %260 = vmatprep.mubr.bf16.mxu0 %v583_v1  ;;  %228 = vmatprep.subr.bf16.mxu0 %v470_v2  ;;  %v474_v5 = vld [vmem:[#allocation6 + $0x1c] ss:$12 sps:$4 sm:$0xff]   ;;  %v476_v6 = vld [vmem:[#allocation6 + $0x20] ss:$12 sps:$4 sm:$0xff]   ;;  %v477_v7 = vld [vmem:[#allocation6 + $0x18] ss:$12 sps:$4 sm:$0xff]  }
  0x2a   :  { %441 = vmatpush3.bf16.msra.mxu1 %v472_v3  ;;  %229 = vmatpush1.bf16.msra.mxu0 %v473_v4  ;;  %v478_v8 = vld [vmem:[#allocation6 + $0x34] ss:$12 sps:$4 sm:$0xff]   ;;  %v480_v9 = vld [vmem:[#allocation6 + $0x38] ss:$12 sps:$4 sm:$0xff]   ;;  %v481_v10 = vld [vmem:[#allocation6 + $0x30] ss:$12 sps:$4 sm:$0xff]  }
  0x2b   :  { %442 = vmatprep.subr.bf16.mxu1 %v581_v0  ;;  %230 = vmatprep.subr.bf16.mxu0 %v474_v5  ;;  %v482_v11 = vld [vmem:[#allocation6 + $0x4c] ss:$12 sps:$4 sm:$0xff]   ;;  %v484_v12 = vld [vmem:[#allocation6 + $0x50] ss:$12 sps:$4 sm:$0xff]   ;;  %v485_v13 = vld [vmem:[#allocation6 + $0x48] ss:$12 sps:$4 sm:$0xff]  }
  0x2c   :  { %v486_v14 = vld [vmem:[#allocation6 + $0x64] ss:$12 sps:$4 sm:$0xff]   ;;  %v488_v15 = vld [vmem:[#allocation6 + $0x68] ss:$12 sps:$4 sm:$0xff]   ;;  %v489_v16 = vld [vmem:[#allocation6 + $0x60] ss:$12 sps:$4 sm:$0xff]  }
  0x2d   :  { %v490_v17 = vld [vmem:[#allocation6 + $0x7c] ss:$12 sps:$4 sm:$0xff]   ;;  %v492_v18 = vld [vmem:[#allocation6 + $0x80] ss:$12 sps:$4 sm:$0xff]   ;;  %v493_v19 = vld [vmem:[#allocation6 + $0x78] ss:$12 sps:$4 sm:$0xff]  }
  0x2e   :  { %443 = vmatpush3.bf16.msra.mxu1 %v476_v6  ;;  %231 = vmatpush1.bf16.msra.mxu0 %v477_v7  ;;  %v494_v20 = vld [vmem:[#allocation6 + $0x94] ss:$12 sps:$4 sm:$0xff]   ;;  %v496_v21 = vld [vmem:[#allocation6 + $0x98] ss:$12 sps:$4 sm:$0xff]   ;;  %v497_v22 = vld [vmem:[#allocation6 + $0x90] ss:$12 sps:$4 sm:$0xff]  }
  0x2f   :  { %444 = vmatprep.subr.bf16.mxu1 %v581_v0  ;;  %232 = vmatprep.subr.bf16.mxu0 %v478_v8  ;;  %v498_v23 = vld [vmem:[#allocation6 + $0xac] ss:$12 sps:$4 sm:$0xff]   ;;  %v500_v24 = vld [vmem:[#allocation6 + $0xb0] ss:$12 sps:$4 sm:$0xff]   ;;  %v501_v25 = vld [vmem:[#allocation6 + $0xa8] ss:$12 sps:$4 sm:$0xff]  }
  0x30   :  { %v336_v28 = vshrl.u32 %v335_v27, 7  ;;  %v333_v30 = vld [vmem:[%s652_s2] sm:$0x7]  ;;  %s584_s2 = smov [#allocation8]  }
  0x31   :  { %s385_s13 = sshll.u32 %s584_s2, 4  ;;  %s386_s13 = int_to_ptr.vmem [resolvable:$true] %s385_s13 }
  0x32   :  { %445 = vmatpush3.bf16.msra.mxu1 %v480_v9  ;;  %233 = vmatpush1.bf16.msra.mxu0 %v481_v10  ;;  %v345_v29 = vsub.s32 2, %v336_v28  ;;  %v337_v31 = vsub.s32 0, %v336_v28  ;;  %v341_v32 = vsub.s32 1, %v336_v28  ;;  %s547_s14 = scalar_lea.vmem %s386_s13, 384  ;;  %p552_p3 = scmp.lt.s32.totalorder %s386_s13, %s386_s13 }
  0x33   :  { %446 = vmatprep.subr.bf16.mxu1 %v581_v0  ;;  %234 = vmatprep.subr.bf16.mxu0 %v482_v11  ;;  %p548_p2 = scmp.ne.s32.totalorder %s386_s13, %s547_s14  ;;  %p553_p4 = scmp.lt.s32.totalorder %s547_s14, %s547_s14 }
  0x34   :  { %v346_v33 = vrot.slane %v333_v30, %v345_v29  ;;  %v338_v34 = vrot.slane %v333_v30, %v337_v31  ;;  %v342_v35 = vrot.slane %v333_v30, %v341_v32 }
  0x35   :  { %p554_p5 = por %p553_p4, %p552_p3 }
  0x36   :  { %447 = vmatpush3.bf16.msra.mxu1 %v484_v12  ;;  %235 = vmatpush1.bf16.msra.mxu0 %v485_v13 }
  0x37   :  { %448 = vmatprep.subr.bf16.mxu1 %v581_v0  ;;  %236 = vmatprep.subr.bf16.mxu0 %v486_v14  ;;  %p555_p6 = pnand %p554_p5, %p548_p2 }
  0x3a   :  { %449 = vmatpush3.bf16.msra.mxu1 %v488_v15  ;;  %237 = vmatpush1.bf16.msra.mxu0 %v489_v16 }
  0x3b   :  { %450 = vmatprep.subr.bf16.mxu1 %v581_v0  ;;  %238 = vmatprep.subr.bf16.mxu0 %v490_v17 }
  0x3e   :  { %451 = vmatpush3.bf16.msra.mxu1 %v492_v18  ;;  %239 = vmatpush1.bf16.msra.mxu0 %v493_v19 }
  0x3f   :  { %452 = vmatprep.subr.bf16.mxu1 %v581_v0  ;;  %240 = vmatprep.subr.bf16.mxu0 %v494_v20 }
  0x42   :  { %453 = vmatpush3.bf16.msra.mxu1 %v496_v21  ;;  %241 = vmatpush1.bf16.msra.mxu0 %v497_v22 }
  0x43   :  { %454 = vmatprep.subr.bf16.mxu1 %v581_v0  ;;  %242 = vmatprep.subr.bf16.mxu0 %v498_v23 }
  0x46   :  { %455 = vmatpush3.bf16.msra.mxu1 %v500_v24  ;;  %243 = vmatpush1.bf16.msra.mxu0 %v501_v25 }
  0x49   :  { %457 = vmatmul.mubr.bf16.vlgmr.msra.gmra.mrb[0].mxu1 %v502_v26  ;;  %261 = vmatmul.mubr.bf16.vlgmr.msra.gmra.mrb[0].mxu0 %v502_v26 }
 0x11c   :  { %v305_v36 = vpop.f32.mrb[0].mxu1  ;;  %v262_v38 = vpop.f32.mrb[0].mxu0 }
 0x11d   :  { %v352_v37 = vadd.f32 %v346_v33, %v305_v36  ;;  %v458_v39 = vpop.f32.mrb[1].mxu1  ;;  %v350_v40 = vadd.f32 %v338_v34, %v262_v38  ;;  %v264_v41 = vpop.f32.mrb[1].mxu0 }
 0x11e   :  { %v308_v42 = vpop.f32.mrb[2].mxu1  ;;  %v351_v44 = vadd.f32 %v342_v35, %v264_v41  ;;  %v266_v46 = vpop.f32.mrb[2].mxu0 }
 0x11f   :  { %v428_v43 = vpack.c.bf16 %v352_v37, %v352_v37  ;;  %v355_v45 = vadd.f32 %v346_v33, %v308_v42  ;;  %v459_v47 = vpop.f32.mrb[3].mxu1  ;;  %v353_v48 = vadd.f32 %v338_v34, %v266_v46  ;;  %v268_v49 = vpop.f32.mrb[3].mxu0 }
 0x120   :  { %v427_v50 = vpack.c.bf16 %v351_v44, %v350_v40  ;;  %v354_v52 = vadd.f32 %v342_v35, %v268_v49 }
 0x121   :  { %377 = vst [vmem:[#allocation8 + $0x8] sm:$0xf] %v428_v43  ;;  %v430_v51 = vpack.c.bf16 %v355_v45, %v355_v45 }
 0x122   :  { %376 = vst [vmem:[#allocation8] sm:$0xff] %v427_v50  ;;  %v429_v53 = vpack.c.bf16 %v354_v52, %v353_v48 }
 0x123   :  { %379 = vst [vmem:[#allocation8 + $0x14] sm:$0xf] %v430_v51 }
 0x124   :  { %378 = vst [vmem:[#allocation8 + $0xc] sm:$0xff] %v429_v53 }
 0x125   :  { %558 = shalt.err (!%p555_p6)
}
 0x126   :  { %s559_s17 = scalar_lea.hbm %s653_s3, 384 }
 0x127   :  { %p560_p7 = scmp.ne.s32.totalorder %s653_s3, %s559_s17  ;;  %p563_p8 = scmp.lt.u32.totalorder %s559_s17, %s653_s3 }
 0x129   :  { %p565_p9 = pnand %p563_p8, %p560_p7 }
 0x12b   :  { %568 = shalt.err (!%p565_p9)
}
 0x12c   :  { %391 = dma.vmem_to_hbm [thread:$0]  %s386_s13, 384, %s653_s3, [#allocation5], %s579_s0, %s579_s0, %s580_s9  }
 0x12d   :  { %573 = dma.done.wait [#allocation5], 384  }
 0x12e   :  { %574 = vsyncadd [#allocation5], 4294966912 }
 0x12f   :  { %395 = vsyncpa [#allocation4], 1 }
 0x130   :  { %396 = vsyncpa [#allocation7], 1 }
 0x131   :  { %397 = vsyncpa [#allocation5], 1 }

</bundles_post_ra>
